<compile_context>
chip_gen: v7x
topology: tpu7x:2x2x1
jax: 0.10.0
libtpu: 0.0.40
codegen_flags: <defaults>
</compile_context>

<pallas_src>
import functools

import numpy as np
import jax
import jax.numpy as jnp
from jax.experimental import pallas as pl
from jax.experimental.pallas import tpu as pltpu

EXCESS_CONST = 1.1  # same constant as DPCN / imreg_dft


def _logpolar_kernel(cxT_ref, ryT_ref, plane_ref, out_ref):
  """Separable bilinear log-polar resampling for one image plane / one P tile.

  cxT_ref   : [W, Pt]   column (x) interpolation weights (<=2 nonzeros / column)
  ryT_ref   : [H, Pt]   row    (y) interpolation weights, f32
  plane_ref : [1, H, W] one image plane (lane-dense, W in lanes)
  out_ref   : [1, 1, Pt] lane-dense output (Pt output pixels along lanes)
  """
  # Stage 1 (MXU): column interpolation, contract over W.
  tmp = jnp.dot(plane_ref[0], cxT_ref[...],
                preferred_element_type=jnp.float32)                # [H, Pt] f32
  # Stage 2 (VPU + sublane reduce): row interpolation, contract over H.
  out_ref[0] = jnp.sum(ryT_ref[...] * tmp, axis=0, keepdims=True)  # [1, Pt]


def _choose_p_tile(P, max_tile=2048):
  """Largest tile of the output-pixel axis that is either the full axis or a
  multiple-of-128 divisor of P, bounded by max_tile (VMEM budget, incl. v7x)."""
  if P <= max_tile:
    return P
  for t in range(max_tile, 127, -128):
    if P % t == 0:
      return t
  return P  # fallback: whole axis (still correct, just bigger blocks)


def log_polar_transform(x_nchw, out_size, compute_dtype=jnp.float32):
  """Pallas implementation of LogPolar.forward. Returns (out_nchw, logbase).

  compute_dtype: dtype of the MXU operands (image plane + column weights).
    float32 (default, exact-ish; recommended on v5e) or bfloat16 (v6e/v7x).
  """
  B, C, H, W = x_nchw.shape
  out_h, out_w = out_size
  P = out_h * out_w
  n_planes = B * C

  # logbase: logbase**out_w == H * EXCESS_CONST / 2  (DPCN convention).
  logbase = jnp.exp(jnp.log(jnp.float32(H) * EXCESS_CONST / 2.0) / jnp.float32(out_w))

  # ---- Batch/channel-invariant sampling math, hoisted out of the kernel ----
  jcol = jnp.arange(out_w, dtype=jnp.float32)
  radius = jnp.power(logbase, jcol)                                   # [out_w]
  theta = jnp.arange(out_h, dtype=jnp.float32) * (np.pi / out_h)      # [out_h]
  xs = (radius[None, :] * jnp.cos(theta)[:, None] + (W / 2.0)).reshape(P)
  ys = (radius[None, :] * jnp.sin(theta)[:, None] + (H / 2.0)).reshape(P)

  x0 = jnp.floor(xs); x1 = x0 + 1.0
  y0 = jnp.floor(ys); y1 = y0 + 1.0
  x0c = jnp.clip(x0, 0.0, W - 1.0); x1c = jnp.clip(x1, 0.0, W - 1.0)
  y0c = jnp.clip(y0, 0.0, H - 1.0); y1c = jnp.clip(y1, 0.0, H - 1.0)
  # Weights from the *clamped* corners (TF spatial_transformer / DPCN behaviour).
  wx0 = x1c - xs; wx1 = xs - x0c
  wy0 = y1c - ys; wy1 = ys - y0c
  x0i = x0c.astype(jnp.int32); x1i = x1c.astype(jnp.int32)
  y0i = y0c.astype(jnp.int32); y1i = y1c.astype(jnp.int32)

  # Pre-scaled one-hot interpolation operands, transposed so the kernel's lane
  # dimension is the output-pixel axis P (lane-dense everywhere).
  wcol = jnp.arange(W, dtype=jnp.int32)[:, None]                      # [W, 1]
  cxT = (jnp.where(wcol == x0i[None, :], wx0[None, :], 0.0)
         + jnp.where(wcol == x1i[None, :], wx1[None, :], 0.0))        # [W, P]
  hrow = jnp.arange(H, dtype=jnp.int32)[:, None]                      # [H, 1]
  ryT = (jnp.where(hrow == y0i[None, :], wy0[None, :], 0.0)
         + jnp.where(hrow == y1i[None, :], wy1[None, :], 0.0))        # [H, P]

  # Image stays channel-planar [B*C, H, W] (W in lanes); no NHWC transpose.
  planes = x_nchw.reshape(n_planes, H, W).astype(compute_dtype)
  cxT = cxT.astype(compute_dtype)     # MXU operand (bf16 ok on v6e/v7x)
  ryT = ryT.astype(jnp.float32)       # VPU operand, keep f32

  p_tile = _choose_p_tile(P)
  n_ptiles = P // p_tile

  out_flat = pl.pallas_call(
      _logpolar_kernel,
      out_shape=jax.ShapeDtypeStruct((n_planes, 1, P), jnp.float32),
      grid_spec=pltpu.PrefetchScalarGridSpec(
          num_scalar_prefetch=0,
          grid=(n_planes, n_ptiles),
          in_specs=[
              pl.BlockSpec((W, p_tile), lambda n, p: (0, p)),     # CxT
              pl.BlockSpec((H, p_tile), lambda n, p: (0, p)),     # RyT
              pl.BlockSpec((1, H, W), lambda n, p: (n, 0, 0)),    # image plane
          ],
          out_specs=pl.BlockSpec((1, 1, p_tile), lambda n, p: (n, 0, p)),
      ),
      compiler_params=pltpu.CompilerParams(
          dimension_semantics=("parallel", "parallel")),
  )(cxT, ryT, planes)

  out = out_flat.reshape(B, C, out_h, out_w)   # pure reshape, no transpose
  return out, logbase


def _reference(x_nchw, out_size):
  """Pure-JAX gather-based reference for correctness checking."""
  B, C, H, W = x_nchw.shape
  out_h, out_w = out_size
  logbase = jnp.exp(jnp.log(jnp.float32(H) * EXCESS_CONST / 2.0) / jnp.float32(out_w))
  radius = jnp.power(logbase, jnp.arange(out_w, dtype=jnp.float32))
  theta = jnp.arange(out_h, dtype=jnp.float32) * (np.pi / out_h)
  x = (radius[None, :] * jnp.cos(theta)[:, None] + W / 2.0).reshape(-1)
  y = (radius[None, :] * jnp.sin(theta)[:, None] + H / 2.0).reshape(-1)

  x0 = jnp.floor(x); x1 = x0 + 1.0
  y0 = jnp.floor(y); y1 = y0 + 1.0
  x0c = jnp.clip(x0, 0.0, W - 1.0); x1c = jnp.clip(x1, 0.0, W - 1.0)
  y0c = jnp.clip(y0, 0.0, H - 1.0); y1c = jnp.clip(y1, 0.0, H - 1.0)
  wa = (x1c - x) * (y1c - y); wb = (x1c - x) * (y - y0c)
  wc = (x - x0c) * (y1c - y); wd = (x - x0c) * (y - y0c)
  im = jnp.transpose(x_nchw, (0, 2, 3, 1)).reshape(B, H * W, C)

  def gather(yi, xi):
    idx = (yi * W + xi).astype(jnp.int32)
    return jnp.take(im, idx, axis=1)                     # [B, P, C]

  out = (wa[None, :, None] * gather(y0c, x0c) + wb[None, :, None] * gather(y1c, x0c)
         + wc[None, :, None] * gather(y0c, x1c) + wd[None, :, None] * gather(y1c, x1c))
  return out.reshape(B, out_h, out_w, C).transpose(0, 3, 1, 2), logbase


if __name__ == "__main__":
  key = jax.random.PRNGKey(0)
  B, C, H, W = 2, 4, 16, 16
  x = jax.random.normal(key, (B, C, H, W), dtype=jnp.float32)
  out_size = (16, 16)

  ref_out, ref_logbase = _reference(x, out_size)

  # f32 path (exact-ish; recommended on v5e).
  out, logbase = log_polar_transform(x, out_size, compute_dtype=jnp.float32)
  out = jax.block_until_ready(out)
  logbase = jax.block_until_ready(logbase)
  np.testing.assert_allclose(np.asarray(out), np.asarray(ref_out), rtol=1e-4, atol=1e-4)
  np.testing.assert_allclose(float(logbase), float(ref_logbase), rtol=1e-6)
  assert out.shape == (B, C, out_size[0], out_size[1])

  # bf16 MXU-operand path (v6e/v7x-friendly), f32 accumulation.
  out_bf16, _ = log_polar_transform(x, out_size, compute_dtype=jnp.bfloat16)
  out_bf16 = jax.block_until_ready(out_bf16)
  np.testing.assert_allclose(np.asarray(out_bf16), np.asarray(ref_out),
                             rtol=5e-2, atol=5e-2)

  print("KERNEL_OK")
</pallas_src>

<mosaic_0001>
module attributes {stable_mosaic.version = 11 : i64} {
  func.func @_logpolar_kernel(%arg0: i32, %arg1: i32, %arg2: memref<16x256xf32, #tpu.memory_space<vmem>>, %arg3: memref<16x256xf32, #tpu.memory_space<vmem>>, %arg4: memref<1x16x16xf32, #tpu.memory_space<vmem>>, %arg5: memref<1x1x256xf32, #tpu.memory_space<vmem>>) attributes {dimension_semantics = [#tpu.dimension_semantics<parallel>, #tpu.dimension_semantics<parallel>], iteration_bounds = array<i64: 8, 1>, scalar_prefetch = 0 : i64, scratch_operands = 0 : i64, tpu.core_type = #tpu.core_type<tc>, window_params = [{transform_indices = @transform_0, window_bounds = array<i64: 16, 256>}, {transform_indices = @transform_1, window_bounds = array<i64: 16, 256>}, {transform_indices = @transform_2, window_bounds = array<i64: 1, 16, 16>}, {transform_indices = @transform_3, window_bounds = array<i64: 1, 1, 256>}]} {
    %c0 = arith.constant 0 : index
    %c0_0 = arith.constant 0 : index
    %c0_1 = arith.constant 0 : index
    %0 = vector.load %arg4[%c0, %c0_0, %c0_1] : memref<1x16x16xf32, #tpu.memory_space<vmem>>, vector<1x16x16xf32>
    %1 = vector.shape_cast %0 : vector<1x16x16xf32> to vector<16x16xf32>
    %c0_2 = arith.constant 0 : index
    %c0_3 = arith.constant 0 : index
    %2 = vector.load %arg2[%c0_2, %c0_3] : memref<16x256xf32, #tpu.memory_space<vmem>>, vector<16x256xf32>
    %cst = arith.constant dense<0.000000e+00> : vector<16x256xf32>
    %3 = tpu.matmul %1, %2, %cst {dimension_numbers = #tpu.dot_dimension_numbers<[1], [0], [0], [1], [0, 0, 1, 1], [], []>} : vector<16x16xf32>, vector<16x256xf32>, vector<16x256xf32> -> vector<16x256xf32>
    %c0_4 = arith.constant 0 : index
    %c0_5 = arith.constant 0 : index
    %4 = vector.load %arg3[%c0_4, %c0_5] : memref<16x256xf32, #tpu.memory_space<vmem>>, vector<16x256xf32>
    %5 = arith.mulf %4, %3 : vector<16x256xf32>
    %cst_6 = arith.constant dense<0.000000e+00> : vector<256xf32>
    %6 = vector.multi_reduction <add>, %5, %cst_6 [0] : vector<16x256xf32> to vector<256xf32>
    %7 = vector.shape_cast %6 : vector<256xf32> to vector<1x256xf32>
    %c0_7 = arith.constant 0 : index
    %c0_8 = arith.constant 0 : index
    %c0_9 = arith.constant 0 : index
    %8 = vector.load %arg5[%c0_7, %c0_8, %c0_9] : memref<1x1x256xf32, #tpu.memory_space<vmem>>, vector<1x1x256xf32>
    %9 = vector.shape_cast %8 : vector<1x1x256xf32> to vector<1x256xf32>
    %10 = vector.shape_cast %7 : vector<1x256xf32> to vector<1x1x256xf32>
    tpu.vector_store %arg5[%c0_7, %c0_8, %c0_9], %10 {strides = array<i32>} : memref<1x1x256xf32, #tpu.memory_space<vmem>>, vector<1x1x256xf32>,
    return
  }
  func.func @transform_0(%arg0: i32, %arg1: i32) -> (i32, i32) {
    %c0_i32 = arith.constant 0 : i32
    %c0_i32_0 = arith.constant 0 : i32
    return %c0_i32, %arg1 : i32, i32
  }
  func.func @transform_1(%arg0: i32, %arg1: i32) -> (i32, i32) {
    %c0_i32 = arith.constant 0 : i32
    %c0_i32_0 = arith.constant 0 : i32
    return %c0_i32, %arg1 : i32, i32
  }
  func.func @transform_2(%arg0: i32, %arg1: i32) -> (i32, i32, i32) {
    %c0_i32 = arith.constant 0 : i32
    %c0_i32_0 = arith.constant 0 : i32
    %c0_i32_1 = arith.constant 0 : i32
    return %arg0, %c0_i32, %c0_i32_0 : i32, i32, i32
  }
  func.func @transform_3(%arg0: i32, %arg1: i32) -> (i32, i32, i32) {
    %c0_i32 = arith.constant 0 : i32
    %c0_i32_0 = arith.constant 0 : i32
    return %arg0, %c0_i32, %arg1 : i32, i32, i32
  }
}

</mosaic_0001>

<bundles_post_ra>
// kernel: tpu_custom_call.1
= control target key start
LH: loop header
LB: loop body
LE: loop exit
PB: predicated region body
PF: predicated region fallthrough
CT: control target
= control target key end

     0   :  { %8 = vsyncpa [#allocation3], 0  ;;  %s1086_s0 = inlined_call_operand.hbm [shape: f32[16,256], index: 0, kind: input, shape index: {}]   ;;  %s1087_s1 = inlined_call_operand.hbm [shape: f32[16,256], index: 1, kind: input, shape index: {}]   ;;  %s1088_s2 = inlined_call_operand.hbm [shape: f32[8,16,16], index: 2, kind: input, shape index: {}]   ;;  %s1089_s3 = inlined_call_operand.hbm [shape: f32[8,1,256], index: 3, kind: output, shape index: {}]  }
   0x1   :  { %9 = vsyncpa [#allocation6], 0 }
   0x2   :  { %10 = vsyncpa [#allocation4], 0 }
   0x3   :  { %12 = vsyncpa [#allocation4 + $0x1], 0  ;;  %s831_s12 = smov 0   ;;  %s833_s13 = smov 0  }
   0x4   :  { %s835_s14 = smov 0   ;;  %s837_s15 = smov 0  }
   0x5   :  { %s839_s16 = smov 0   ;;  %s841_s17 = smov 0  }
   0x6 LB: > { %s862_s18 = sadd.s32 4294967295, %s799_s17   ;;  %s506_s19 = sadd.s32 4294967294, %s799_s17   ;;  %s799_s17 = sphi %s841_s17, %s18_s17   ;;  %s795_s16 = sphi %s839_s16, %s1111_s16   ;;  %s791_s15 = sphi %s837_s15, %s1110_s15   ;;  %s787_s14 = sphi %s835_s14, %s1109_s14   ;;  %s783_s13 = sphi %s833_s13, %s1108_s13   ;;  %s779_s12 = sphi %s831_s12, %s1107_s12  }
   0x7   : > { %p96_p0 = scmp.ne.s32.totalorder %s787_s14, %s783_s13  ;;  %p97_p1 = scmp.eq.s32.totalorder %s799_s17, 0 }
   0x8   : > { %p102_p2 = scmp.ne.s32.totalorder %s783_s13, %s779_s12  ;;  %p1090_p3 = scmp.eq.s32.totalorder %s862_s18, 0 }
   0x9   : > { %p871_p4 = por %p97_p1, %p96_p0  ;;  %p128_p5 = scmp.eq.s32.totalorder %s862_s18, 7 }
   0xa   : > { %p878_p6 = por %p1090_p3, %p102_p2  ;;  %p134_p7 = scmp.eq.s32.totalorder %s506_s19, 7 }
   0xb   : > { %p882_p8 = por %p128_p5, %p96_p0  ;;  %p507_p9 = scmp.ge.s32.totalorder %s799_s17, 1 }
   0xc   : > { %s1094_s21 = scalar_select %p878_p6, 1, 0 }
   0xd   : > { %s1095_s22 = scalar_select %p882_p8, 1, 0 }
   0xe   : > { %p887_p10 = por %p134_p7, %p102_p2  ;;  %p141_p11 = scmp.lt.s32.totalorder %s799_s17, 9 }
   0xf   : > { %s801_s25 = smov [#allocation2]   ;;  %p563_p0 = scmp.lt.s32.totalorder %s799_s17, 8 }
  0x10   : > { %s1096_s23 = scalar_select %p887_p10, 1, 0 }
  0x11   : > { %p892_p12 = pnand %p507_p9, %p141_p11  ;;  %s156_s26 = sshll.u32 %s801_s25, 4  ;;  %s896_s26 = int_to_ptr.vmem [resolvable:$true] %s156_s26 }
  0x12   : > { %p909_p2 = pnand %p563_p0, %p871_p4  ;;  %s802_s29 = smov [#allocation5]  }
  0x13   : > { %p546_p13 = pneg %p892_p12  ;;  %s172_s30 = sshll.u32 %s802_s29, 4  ;;  %s913_s30 = int_to_ptr.vmem [resolvable:$true] %s172_s30 }
  0x14   : > { %s623_s6 = scalar_lea.hbm %s1086_s0, 512 }
  0x15   : > { %p903_p1 = pnand %p546_p13, %p1090_p3  ;;  %p624_p5 = scmp.ne.s32.totalorder %s1086_s0, %s623_s6 }
  0x16   : > { %p630_p11 = scmp.lt.u32.totalorder %s623_s6, %s1086_s0 }
  0x17   : > { %p625_p7 = pneg %p903_p1 }
  0x19   : > { %p626_p4 = pnand %p625_p7, %p624_p5 }
  0x1b   : > { %p627_p9 = pneg %p626_p4 }
  0x1d   : > { %p632_p13 = pnand %p630_p11, %p627_p9 }
  0x1f   : > { %635 = shalt.err (!%p632_p13)
}
  0x20   : > { %s636_s11 = scalar_lea.vmem %s896_s26, 512  ;;  %p644_p8 = scmp.lt.s32.totalorder %s896_s26, %s896_s26 }
  0x21   : > { %p637_p0 = scmp.ne.s32.totalorder %s896_s26, %s636_s11  ;;  %p645_p5 = scmp.lt.s32.totalorder %s636_s11, %s636_s11 }
  0x23   : > { %p639_p3 = pnand %p637_p0, %p625_p7  ;;  %p646_p4 = por %p645_p5, %p644_p8 }
  0x25   : > { %p640_p10 = pneg %p639_p3 }
  0x27   : > { %p647_p6 = pnand %p646_p4, %p640_p10 }
  0x29   : > { %650 = shalt.err (!%p647_p6)
}
  0x2a   : > { %s803_s19 = smov 256   ;;  %s804_s20 = smov 16  }
  0x2b   : > { %549 = dma.hbm_to_vmem [thread:$0]  (!%p903_p1), %s1086_s0, 512, %s896_s26, [#allocation3], %s803_s19, %s803_s19, %s804_s20  }
  0x2c   : > { %s651_s6 = scalar_lea.hbm %s1087_s1, 512 }
  0x2d   : > { %p652_p3 = scmp.ne.s32.totalorder %s1087_s1, %s651_s6  ;;  %p658_p10 = scmp.lt.u32.totalorder %s651_s6, %s1087_s1 }
  0x2f   : > { %p654_p6 = pnand %p652_p3, %p625_p7 }
  0x31   : > { %p655_p8 = pneg %p654_p6 }
  0x33   : > { %p660_p9 = pnand %p658_p10, %p655_p8 }
  0x35   : > { %663 = shalt.err (!%p660_p9)
}
  0x36   : > { %s664_s26 = scalar_lea.vmem %s913_s30, 512  ;;  %p672_p5 = scmp.lt.s32.totalorder %s913_s30, %s913_s30 }
  0x37   : > { %p665_p11 = scmp.ne.s32.totalorder %s913_s30, %s664_s26  ;;  %p673_p4 = scmp.lt.s32.totalorder %s664_s26, %s664_s26 }
  0x39   : > { %p667_p13 = pnand %p665_p11, %p625_p7  ;;  %p674_p3 = por %p673_p4, %p672_p5 }
  0x3b   : > { %p668_p0 = pneg %p667_p13 }
  0x3d   : > { %p675_p6 = pnand %p674_p3, %p668_p0 }
  0x3f   : > { %678 = shalt.err (!%p675_p6)
}
  0x40   : > { %552 = dma.hbm_to_vmem [thread:$0]  (!%p903_p1), %s1087_s1, 512, %s913_s30, [#allocation6], %s803_s19, %s803_s19, %s804_s20  }
  0x41   : > { %s89_s29 = sadd.s32 1, %s787_s14  ;;  %s30_s4 = sadd.s32 1, %s795_s16 }
  0x42   : > { %s186_s5 = sand.u32 1, %s799_s17   ;;  %p32_p7 = scmp.ge.s32.totalorder %s30_s4, 8 }
  0x43   : > { %s188_s6 = sand.u32 1, %s787_s14   ;;  %s526_s27 = sshll.u32 %s795_s16, 8 }
  0x44   : > { %s1113_s4 = smov (%p32_p7, %s30_s4), 0  ;;  %s511_s7 = sshll.u32 %s188_s6, 4 }
  0x45   : > { %s977_s10 = scalar_lea.hbm %s1088_s2, %s526_s27  ;;  %s86_s30 = ssub.s32 %s795_s16, %s1113_s4 }
  0x46   : > { %p87_p1 = scmp.eq.s32.totalorder %s86_s30, 0  ;;  %s190_s19 = scalar_lea.vmem [#allocation7], %s511_s7 }
  0x47   : > { %s197_s20 = sshll.u32 %s190_s19, 4  ;;  %s986_s11 = scalar_lea.sflag [#allocation3], %s186_s5  ;;  %s981_s20 = int_to_ptr.vmem [resolvable:$true] %s197_s20 }
  0x48   : > { %s984_s26 = scalar_select %p87_p1, %s787_s14, %s89_s29  }
  0x49   : > { %s679_s25 = scalar_lea.hbm %s977_s10, 256  ;;  %p681_p10 = pneg %p909_p2 }
  0x4a   : > { %p680_p8 = scmp.ne.s32.totalorder %s977_s10, %s679_s25  ;;  %s684_s8 = scalar_lea.hbm %s1088_s2, 2048 }
  0x4b   : > { %p685_p13 = scmp.lt.u32.totalorder %s977_s10, %s1088_s2  ;;  %p686_p0 = scmp.lt.u32.totalorder %s684_s8, %s679_s25 }
  0x4c   : > { %p682_p9 = pnand %p681_p10, %p680_p8  ;;  %p688_p4 = scmp.lt.u32.totalorder %s679_s25, %s977_s10 }
  0x4d   : > { %p687_p5 = por %p686_p0, %p685_p13 }
  0x4e   : > { %p683_p11 = pneg %p682_p9 }
  0x4f   : > { %p689_p3 = por %p688_p4, %p687_p5 }
  0x51   : > { %p690_p6 = pnand %p689_p3, %p683_p11 }
  0x53   : > { %693 = shalt.err (!%p690_p6)
}
  0x54   : > { %s694_s29 = scalar_lea.vmem %s981_s20, 256  ;;  %s805_s5 = smov [#allocation7]  }
  0x55   : > { %p695_p7 = scmp.ne.s32.totalorder %s981_s20, %s694_s29  ;;  %s699_s30 = sshll.u32 %s805_s5, 4  ;;  %s700_s30 = int_to_ptr.vmem [resolvable:$false] %s699_s30 }
  0x56   : > { %s701_s19 = scalar_lea.vmem %s700_s30, 512  ;;  %p702_p9 = scmp.lt.s32.totalorder %s981_s20, %s700_s30 }
  0x57   : > { %p697_p1 = pnand %p695_p7, %p681_p10  ;;  %p703_p13 = scmp.lt.s32.totalorder %s701_s19, %s694_s29 }
  0x59   : > { %p698_p8 = pneg %p697_p1  ;;  %p704_p0 = por %p703_p13, %p702_p9 }
  0x5b   : > { %p705_p5 = pnand %p704_p0, %p698_p8 }
  0x5d   : > { %708 = shalt.err (!%p705_p5)
}
  0x5e   : > { %s806_s25 = smov 128   ;;  %s807_s6 = smov 8  }
  0x5f   : > { %556 = dma.hbm_to_vmem [thread:$0]  (!%p909_p2), %s977_s10, 256, %s981_s20, %s986_s11, %s806_s25, %s806_s25, %s807_s6  }
  0x60   : > { %209 = sbr.rel (%p892_p12) target bundleno = 368 (0x170), region = 32  ;;  %p1100_p10 = scmp.eq.s32.totalorder (!%p892_p12), %s862_s18, 0 }
  0x67   : > { %762 = dma.done.wait (%p1100_p10), [#allocation3], 512   ;;  %p1101_p11 = pmov %p1100_p10 }
  0x68   : > { %p1102_p4 = pmov %p1100_p10 }
  0x69   : > { %764 = vsyncadd (%p1101_p11), [#allocation3], 4294966784 }
  0x6a   : > { %766 = dma.done.wait (%p1102_p4), [#allocation6], 512   ;;  %p1103_p3 = pmov %p1102_p4 }
  0x6b   : > { %s219_s28 = sand.u32 1, %s862_s18   ;;  %s1026_s10 = sand.u32 1, %s783_s13  }
  0x6c   : > { %768 = vsyncadd (%p1103_p3), [#allocation6], 4294966784  ;;  %s517_s24 = sshll.u32 %s1026_s10, 4  ;;  %s220_s20 = scalar_lea.sflag [#allocation3], %s219_s28 }
  0x6d   : > { %s223_s11 = scalar_lea.vmem [#allocation7], %s517_s24  ;;  %p1104_p12 = scmp.ne.s32.totalorder %s1094_s21, 0 }
  0x6f   : > { %770 = dma.done.wait (%p1104_p12), %s220_s20, 256  }
  0x70   : > { %772 = vsyncadd (%p1104_p12), %s220_s20, 4294967040  ;;  %v808_v0 = vmov 0.0   ;;  %v252_v1 = vld [vmem:[#allocation2 + $0x8] sm:$0xff]  ;;  %v254_v2 = vld [vmem:[#allocation2 + $0x18] sm:$0xff]  ;;  %vm255_vm0 = vcmask 130048   ;;  %v367_v29 = vlaneseq  ;;  %s518_s18 = sshll.u32 %s1026_s10, 1 }
  0x71   : > { %326 = vmatprep.mubr.f32.mxu0 %v808_v0  ;;  %332 = vmatprep.mubr.f32.mxu1 %v808_v0  ;;  %v251_v3 = vld [vmem:[#allocation2] sm:$0xff]  ;;  %v528_v4 = vpack.c.bf16 %v254_v2, %v252_v1  ;;  %v253_v5 = vld [vmem:[#allocation2 + $0x10] sm:$0xff]  ;;  %v250_v8 = vld [vmem:[%s223_s11 + $0x8] sm:$0xff]  ;;  %v809_v27 = vmov 1966171168   ;;  %s527_s21 = sshll.u32 %s791_s15, 5 }
  0x72   : > { %v530_v6 = vpack.c.bf16 %v253_v5, %v251_v3  ;;  %v249_v7 = vld [vmem:[%s223_s11] sm:$0xff]  ;;  %v340_v11 = vld [vmem:[#allocation5 + $0x8] sm:$0xff]  ;;  %v342_v12 = vld [vmem:[#allocation5 + $0x18] sm:$0xff]  ;;  %v365_v28 = vunpack.c.l.s4 %v809_v27  ;;  %v368_v35 = vshrl.u32 %v367_v29, 7  ;;  %s245_s27 = scalar_lea.vmem [#allocation8], %s518_s18  ;;  %vm381_vm1 = vcmp.lt.s32.totalorder %v367_v29, 256  ;;  %s1038_s29 = scalar_lea.hbm %s1089_s3, %s527_s21 }
  0x73   : > { %529 = vmatprep.subr.bf16.mxu0 %v528_v4  ;;  %532 = vmatprep.subr.bf16.mxu1 %v528_v4  ;;  %v339_v9 = vld [vmem:[#allocation5] sm:$0xff]  ;;  %v341_v10 = vld [vmem:[#allocation5 + $0x10] sm:$0xff]  ;;  %s401_s8 = sshll.u32 %s245_s27, 4  ;;  %s385_s5 = scalar_lea.sflag [#allocation4], %s1026_s10  ;;  %s1040_s8 = int_to_ptr.vmem [resolvable:$true] %s401_s8 }
  0x74   : > { %531 = vmatpush1.bf16.msra.mxu0 %v530_v6  ;;  %533 = vmatpush1.bf16.msra.mxu1 %v530_v6  ;;  %v366_v34 = vunpack.c.0.s8 %v365_v28  ;;  %s709_s30 = scalar_lea.vmem %s1040_s8, 32  ;;  %p1105_p6 = scmp.ne.s32.totalorder %s1095_s22, 0 }
  0x75   : > { %p710_p2 = scmp.ne.s32.totalorder %s1040_s8, %s709_s30  ;;  %s810_s15 = smov [#allocation8]  }
  0x76   : > { %v369_v40 = vsub.s32 %v366_v34, %v368_v35  ;;  %s713_s19 = sshll.u32 %s810_s15, 4  ;;  %s714_s19 = int_to_ptr.vmem [resolvable:$false] %s713_s19 }
  0x77   : > { %519 = vmatmul.mubr.msk.f32.vlgmr.msra.gmra.mrb[0].mxu0 %vm255_vm0, %v249_v7  ;;  %520 = vmatmul.mubr.msk.f32.vlgmr.msra.gmra.mrb[0].mxu1 %vm255_vm0, %v250_v8  ;;  %p711_p7 = pnand %p710_p2, %p1105_p6  ;;  %s715_s25 = scalar_lea.vmem %s714_s19, 64 }
  0x78   : > { %p716_p8 = scmp.lt.s32.totalorder %s1040_s8, %s714_s19  ;;  %p717_p9 = scmp.lt.s32.totalorder %s715_s25, %s709_s30 }
  0x79   : > { %p712_p1 = pneg %p711_p7 }
  0x7a   : > { %p718_p13 = por %p717_p9, %p716_p8 }
  0x7c   : > { %p719_p0 = pnand %p718_p13, %p712_p1 }
 0x14a   : > { %v328_v13 = vpop.f32.mrb[0].mxu0  ;;  %v334_v14 = vpop.f32.mrb[0].mxu1 }
 0x14b   : > { %v343_v15 = vmul.f32 %v339_v9, %v328_v13  ;;  %v345_v16 = vmul.f32 %v341_v10, %v334_v14  ;;  %v330_v17 = vpop.f32.mrb[1].mxu0  ;;  %v336_v18 = vpop.f32.mrb[1].mxu1 }
 0x14c   : > { %v344_v19 = vmul.f32 %v340_v11, %v330_v17  ;;  %v346_v20 = vmul.f32 %v342_v12, %v336_v18 }
 0x14d   : > { %v347_v21 = vadd.f32 %v345_v16, %v343_v15 }
 0x14e   : > { %v354_v22 = vadd.f32 %v346_v20, %v344_v19 }
 0x14f   : > { %v348_v23 = vrot.slane %v347_v21, 4 }
 0x150   : > { %v355_v24 = vrot.slane %v354_v22, 4 }
 0x151   : > { %v349_v25 = vadd.f32 %v348_v23, %v347_v21 }
 0x152   : > { %v356_v26 = vadd.f32 %v355_v24, %v354_v22 }
 0x153   : > { %v350_v30 = vrot.slane %v349_v25, 2 }
 0x154   : > { %v357_v31 = vrot.slane %v356_v26, 2 }
 0x155   : > { %v351_v32 = vadd.f32 %v350_v30, %v349_v25 }
 0x156   : > { %v358_v33 = vadd.f32 %v357_v31, %v356_v26 }
 0x157   : > { %v352_v36 = vrot.slane %v351_v32, 1 }
 0x158   : > { %v359_v37 = vrot.slane %v358_v33, 1 }
 0x159   : > { %v353_v38 = vadd.f32 %v352_v36, %v351_v32 }
 0x15a   : > { %v360_v39 = vadd.f32 %v359_v37, %v358_v33 }
 0x15c   : > { %v363_v41 = vcombine.low %v353_v38, %v360_v39 }
 0x15e   : > { %v370_v42 = vrot.slane %v363_v41, %v369_v40 }
 0x160   : > { %v377_v43 = vrot.slane %v370_v42, %v369_v40 }
 0x162   : > { %383 = vst.msk [vmem:[%s245_s27] sm:$0x3] %vm381_vm1, %v377_v43 }
 0x163   : > { %722 = shalt.err (!%p719_p0)
}
 0x164   : > { %s723_s6 = scalar_lea.hbm %s1038_s29, 32  ;;  %s727_s24 = scalar_lea.hbm %s1089_s3, 256 }
 0x165   : > { %p724_p5 = scmp.ne.s32.totalorder %s1038_s29, %s723_s6  ;;  %p728_p4 = scmp.lt.u32.totalorder %s1038_s29, %s1089_s3 }
 0x166   : > { %p729_p3 = scmp.lt.u32.totalorder %s727_s24, %s723_s6  ;;  %p731_p2 = scmp.lt.u32.totalorder %s723_s6, %s1038_s29 }
 0x167   : > { %p725_p10 = pnand %p724_p5, %p1105_p6 }
 0x168   : > { %p730_p12 = por %p729_p3, %p728_p4 }
 0x169   : > { %p726_p11 = pneg %p725_p10 }
 0x16a   : > { %p732_p7 = por %p731_p2, %p730_p12 }
 0x16c   : > { %p733_p1 = pnand %p732_p7, %p726_p11 }
 0x16e   : > { %736 = shalt.err (!%p733_p1)
}
 0x16f   : > { %544 = dma.vmem_to_hbm [thread:$0]  (%p1105_p6), %s1040_s8, 32, %s1038_s29, %s385_s5  }
 0x170 PF: > { %p566_p8 = scmp.ge.s32.totalorder %s799_s17, 2  ;;  %s413_s18 = sand.u32 1, %s779_s12  }
 0x171   : > { %p1106_p9 = scmp.ne.s32.totalorder %s1096_s23, 0  ;;  %s414_s21 = scalar_lea.sflag [#allocation4], %s413_s18 }
 0x173   : > { %p558_p13 = pnand %p566_p8, %p1106_p9 }
 0x175   : > { %774 = dma.done.wait (!%p558_p13), %s414_s21, 32  }
 0x176   : > { %776 = vsyncadd (!%p558_p13), %s414_s21, 4294967264  ;;  %s18_s17 = sadd.s32 1, %s799_s17   ;;  %s1107_s12 = smov %s783_s13 }
 0x177   : > { %p15_p0 = scmp.ge.s32.totalorder %s18_s17, 10   ;;  %s1108_s13 = smov %s787_s14 }
 0x178   : > { %s1109_s14 = smov %s984_s26  ;;  %s1110_s15 = smov %s795_s16 }
 0x179   : > { %s1111_s16 = smov %s1113_s4  ;;  %17 = sbr.rel (!%p15_p0) target bundleno = 6 (0x6), region = 86 }
 0x180   :  { %419 = vsyncpa [#allocation3], 1 }
 0x181   :  { %421 = vsyncpa [#allocation3 + $0x1], 1 }
 0x182   :  { %422 = vsyncpa [#allocation6], 1 }
 0x183   :  { %423 = vsyncpa [#allocation4], 1 }
 0x184   :  { %425 = vsyncpa [#allocation4 + $0x1], 1 }

</bundles_post_ra>
